<compile_context>
chip_gen: v7x
topology: tpu7x:2x2x1
jax: 0.10.0
libtpu: 0.0.40
codegen_flags: <defaults>
</compile_context>

<pallas_src>
import functools
import math

import jax
import jax.numpy as jnp
from jax.experimental import pallas as pl
from jax.experimental.pallas import tpu as pltpu


def _bert_attention_kernel(x_ref, wqkv_ref, bqkv_ref, wo_ref, bo_ref,
                           gamma_ref, beta_ref, o_ref,
                           q_scr, k_scr, v_scr,
                           *, num_heads, head_dim, tq, eps):
    # Blocks: x_ref [1, S, H] (full sequence, same block across query tiles),
    #         o_ref [1, TQ, H], weights resident via constant index_maps.
    t = pl.program_id(1)
    S = x_ref.shape[1]
    H = num_heads * head_dim

    # --- fused QKV projection, once per batch element (first query tile) ---
    @pl.when(t == 0)
    def _():
        x_full = x_ref[0].astype(jnp.bfloat16)                          # [S, H]
        qkv = jnp.dot(x_full, wqkv_ref[...],
                      preferred_element_type=jnp.float32) + bqkv_ref[...]
        # Split into head-major [NH, S, hd] scratch (one-time relayout per batch
        # element; the 1/sqrt(head_dim) scale is already folded into Wq / bq).
        for h in range(num_heads):
            lo = h * head_dim
            q_scr[h] = qkv[:, lo:lo + head_dim].astype(jnp.bfloat16)
            k_scr[h] = qkv[:, H + lo:H + lo + head_dim].astype(jnp.bfloat16)
            v_scr[h] = qkv[:, 2 * H + lo:2 * H + lo + head_dim].astype(jnp.bfloat16)

    # --- batched-head scaled-dot-product attention for this query tile ---
    q0 = pl.multiple_of(t * tq, tq)
    qh = q_scr[:, pl.ds(q0, tq), :]                                     # [NH, TQ, hd]
    kh = k_scr[...]                                                     # [NH, S,  hd]
    vh = v_scr[...]                                                     # [NH, S,  hd]

    # TODO(synk): attention_mask / head_mask not modeled (None in the reference call);
    # attention-probs dropout treated as identity (eval mode).
    scores = jnp.einsum("hqd,hkd->hqk", qh, kh,
                        preferred_element_type=jnp.float32)             # [NH, TQ, S]
    scores = scores - jnp.max(scores, axis=-1, keepdims=True)
    p = jnp.exp(scores)
    denom = jnp.sum(p, axis=-1, keepdims=True)
    p = p * pl.reciprocal(denom, approx=True)        # EUP slot; ~1e-3 rel err
    ctx = jnp.einsum("hqk,hkd->hqd", p.astype(jnp.bfloat16), vh,
                     preferred_element_type=jnp.float32)                # [NH, TQ, hd]
    # Merge heads back to [TQ, H] (single relayout per tile).
    ctx2d = jnp.concatenate([ctx[h] for h in range(num_heads)], axis=-1)

    # --- BertSelfOutput: dense + residual + LayerNorm (f32) ---
    x_tile = x_ref[0, pl.ds(q0, tq), :]                                 # [TQ, H] f32
    attn_out = jnp.dot(ctx2d.astype(jnp.bfloat16), wo_ref[...],
                       preferred_element_type=jnp.float32) + bo_ref[...]
    # TODO(synk): hidden-state dropout treated as identity (eval mode).
    y = attn_out + x_tile
    mean = jnp.mean(y, axis=-1, keepdims=True)
    yc = y - mean
    var = jnp.mean(yc * yc, axis=-1, keepdims=True)
    yn = yc * jax.lax.rsqrt(var + eps)
    out = yn * gamma_ref[...] + beta_ref[...]
    o_ref[0] = out.astype(o_ref.dtype)


def _choose_query_tile(S, max_tq):
    """Largest query tile <= max_tq that divides S and is a multiple of 8 (or S)."""
    if S <= max_tq:
        return S
    for cand in range(max_tq - (max_tq % 8), 7, -8):
        if S % cand == 0:
            return cand
    return S


def _vmem_limit_bytes():
    """Per-chip VMEM budget (v5e/v6e: up to 96 MiB, v7x: ~48 MiB), with fallback."""
    try:
        cap = int(pltpu.get_tpu_info().vmem_capacity_bytes)
    except Exception:
        cap = 64 * 1024 * 1024
    return max(32 * 1024 * 1024, min(cap * 3 // 4, 96 * 1024 * 1024))


def bert_attention(hidden_states, params, *, num_heads, eps=1e-12, max_tq=256):
    """hidden_states: [B, S, H] -> [B, S, H] (BertAttention forward, eval mode)."""
    B, S, H = hidden_states.shape
    assert H % num_heads == 0
    head_dim = H // num_heads

    wq, bq, wk, bk, wv, bv, wo, bo, gamma, beta = params
    # NOTE: weights expected in [in, out] layout (x @ W). Transpose when importing
    # HuggingFace nn.Linear weights (which are stored [out, in]).
    scale = 1.0 / math.sqrt(head_dim)
    # Fused QKV weight [H, 3H] / bias [1, 3H]; attention scale folded into the Q part.
    wqkv = jnp.concatenate([wq * scale, wk, wv], axis=1).astype(jnp.bfloat16)
    bqkv = jnp.concatenate([bq * scale, bk, bv]).reshape(1, 3 * H).astype(jnp.float32)
    wo_b = wo.astype(jnp.bfloat16)
    row = lambda a: a.reshape(1, H).astype(jnp.float32)

    tq = _choose_query_tile(S, max_tq)
    assert S % tq == 0
    num_q_tiles = S // tq

    kernel = functools.partial(_bert_attention_kernel, num_heads=num_heads,
                               head_dim=head_dim, tq=tq, eps=eps)

    x_spec = pl.BlockSpec((1, S, H), lambda b, t: (b, 0, 0))      # full seq per batch elem
    o_spec = pl.BlockSpec((1, tq, H), lambda b, t: (b, t, 0))     # lane-dense output tile
    const = lambda shape: pl.BlockSpec(shape, lambda b, t: (0, 0))  # resident params

    flops = (2 * B * S * H * 3 * H                        # fused QKV projection
             + 4 * B * num_heads * S * S * head_dim       # scores + ctx matmuls
             + 2 * B * S * H * H)                         # output dense
    transcendentals = B * num_heads * S * S               # softmax exp
    bytes_accessed = int(hidden_states.size * hidden_states.dtype.itemsize * 2
                         + wqkv.size * 2 + wo_b.size * 2 + 6 * H * 4)

    return pl.pallas_call(
        kernel,
        out_shape=jax.ShapeDtypeStruct((B, S, H), hidden_states.dtype),
        grid=(B, num_q_tiles),
        in_specs=[x_spec,
                  const((H, 3 * H)), const((1, 3 * H)),    # fused QKV weight / bias
                  const((H, H)), const((1, H)),            # output dense weight / bias
                  const((1, H)), const((1, H))],           # LayerNorm gamma / beta
        out_specs=o_spec,
        scratch_shapes=[pltpu.VMEM((num_heads, S, head_dim), jnp.bfloat16),   # Q
                        pltpu.VMEM((num_heads, S, head_dim), jnp.bfloat16),   # K
                        pltpu.VMEM((num_heads, S, head_dim), jnp.bfloat16)],  # V
        compiler_params=pltpu.CompilerParams(
            dimension_semantics=("parallel", "arbitrary"),
            vmem_limit_bytes=_vmem_limit_bytes(),
        ),
        cost_estimate=pl.CostEstimate(flops=flops,
                                      transcendentals=transcendentals,
                                      bytes_accessed=bytes_accessed),
    )(hidden_states, wqkv, bqkv, wo_b, row(bo), row(gamma), row(beta))


def _reference(x, params, num_heads, eps):
    """Plain-JAX BertAttention forward (eval, no mask, absolute pos-emb), f32."""
    wq, bq, wk, bk, wv, bv, wo, bo, gamma, beta = params
    B, S, H = x.shape
    hd = H // num_heads

    q = x @ wq + bq
    k = x @ wk + bk
    v = x @ wv + bv

    def split(t):
        return t.reshape(B, S, num_heads, hd).transpose(0, 2, 1, 3)

    qh, kh, vh = split(q), split(k), split(v)
    scores = jnp.einsum("bnqd,bnkd->bnqk", qh, kh) / math.sqrt(hd)
    probs = jax.nn.softmax(scores, axis=-1)
    ctx = jnp.einsum("bnqk,bnkd->bnqd", probs, vh)
    ctx = ctx.transpose(0, 2, 1, 3).reshape(B, S, H)

    attn_out = ctx @ wo + bo
    y = attn_out + x
    mean = y.mean(-1, keepdims=True)
    var = ((y - mean) ** 2).mean(-1, keepdims=True)
    return (y - mean) / jnp.sqrt(var + eps) * gamma + beta


def _make_params(key, H):
    keys = jax.random.split(key, 9)
    wscale = 1.0 / math.sqrt(H)
    wq = jax.random.normal(keys[0], (H, H), jnp.float32) * wscale
    bq = jax.random.normal(keys[1], (H,), jnp.float32) * 0.01
    wk = jax.random.normal(keys[2], (H, H), jnp.float32) * wscale
    bk = jax.random.normal(keys[3], (H,), jnp.float32) * 0.01
    wv = jax.random.normal(keys[4], (H, H), jnp.float32) * wscale
    bv = jax.random.normal(keys[5], (H,), jnp.float32) * 0.01
    wo = jax.random.normal(keys[6], (H, H), jnp.float32) * wscale
    bo = jax.random.normal(keys[7], (H,), jnp.float32) * 0.01
    gamma = 1.0 + jax.random.normal(keys[8], (H,), jnp.float32) * 0.01
    beta = jnp.zeros((H,), jnp.float32)
    return (wq, bq, wk, bk, wv, bv, wo, bo, gamma, beta)


if __name__ == "__main__":
    EPS = 1e-12
    key = jax.random.PRNGKey(0)
    k_param, k_x1, k_x2 = jax.random.split(key, 3)

    # Config 1: batch=2, seq=8, hidden=32, heads=4 (single query tile).
    B, S, H, NH = 2, 8, 32, 4
    params = _make_params(k_param, H)
    x1 = jax.random.normal(k_x1, (B, S, H), dtype=jnp.float32)
    out1 = bert_attention(x1, params, num_heads=NH, eps=EPS)
    jax.block_until_ready(out1)
    ref1 = _reference(x1, params, NH, EPS)
    assert out1.shape == (B, S, H)
    err1 = float(jnp.max(jnp.abs(out1 - ref1)))
    assert jnp.allclose(out1, ref1, atol=5e-2, rtol=5e-2), f"max abs err = {err1}"

    # Config 2: seq=16 with tq=8 -> exercises the multi-query-tile / scratch-reuse path.
    S2 = 16
    x2 = jax.random.normal(k_x2, (B, S2, H), dtype=jnp.float32)
    out2 = bert_attention(x2, params, num_heads=NH, eps=EPS, max_tq=8)
    jax.block_until_ready(out2)
    ref2 = _reference(x2, params, NH, EPS)
    assert out2.shape == (B, S2, H)
    err2 = float(jnp.max(jnp.abs(out2 - ref2)))
    assert jnp.allclose(out2, ref2, atol=5e-2, rtol=5e-2), f"max abs err = {err2}"

    print("KERNEL_OK")
</pallas_src>

<mosaic_0001>
module attributes {stable_mosaic.version = 11 : i64} {
  func.func @_bert_attention_kernel(%arg0: i32, %arg1: i32, %arg2: memref<1x8x32xf32, #tpu.memory_space<vmem>>, %arg3: memref<32x96xbf16, #tpu.memory_space<vmem>>, %arg4: memref<1x96xf32, #tpu.memory_space<vmem>>, %arg5: memref<32x32xbf16, #tpu.memory_space<vmem>>, %arg6: memref<1x32xf32, #tpu.memory_space<vmem>>, %arg7: memref<1x32xf32, #tpu.memory_space<vmem>>, %arg8: memref<1x32xf32, #tpu.memory_space<vmem>>, %arg9: memref<1x8x32xf32, #tpu.memory_space<vmem>>, %arg10: memref<4x8x8xbf16, #tpu.memory_space<vmem>>, %arg11: memref<4x8x8xbf16, #tpu.memory_space<vmem>>, %arg12: memref<4x8x8xbf16, #tpu.memory_space<vmem>>) attributes {dimension_semantics = [#tpu.dimension_semantics<parallel>, #tpu.dimension_semantics<arbitrary>], iteration_bounds = array<i64: 2, 1>, scalar_prefetch = 0 : i64, scratch_operands = 3 : i64, tpu.core_type = #tpu.core_type<tc>, window_params = [{transform_indices = @transform_0, window_bounds = array<i64: 1, 8, 32>}, {pipeline_mode = #tpu.pipeline_mode<synchronous>, transform_indices = @transform_1, window_bounds = array<i64: 32, 96>}, {pipeline_mode = #tpu.pipeline_mode<synchronous>, transform_indices = @transform_2, window_bounds = array<i64: 1, 96>}, {pipeline_mode = #tpu.pipeline_mode<synchronous>, transform_indices = @transform_3, window_bounds = array<i64: 32, 32>}, {pipeline_mode = #tpu.pipeline_mode<synchronous>, transform_indices = @transform_4, window_bounds = array<i64: 1, 32>}, {pipeline_mode = #tpu.pipeline_mode<synchronous>, transform_indices = @transform_5, window_bounds = array<i64: 1, 32>}, {pipeline_mode = #tpu.pipeline_mode<synchronous>, transform_indices = @transform_6, window_bounds = array<i64: 1, 32>}, {transform_indices = @transform_7, window_bounds = array<i64: 1, 8, 32>}]} {
    %c0_i32 = arith.constant 0 : i32
    %0 = arith.cmpi eq, %arg1, %c0_i32 : i32
    %1 = arith.extui %0 : i1 to i32
    %c0_i32_0 = arith.constant 0 : i32
    %2 = arith.cmpi ne, %1, %c0_i32_0 : i32
    scf.if %2 {
      %c0_30 = arith.constant 0 : index
      %c0_31 = arith.constant 0 : index
      %c0_32 = arith.constant 0 : index
      %66 = vector.load %arg2[%c0_30, %c0_31, %c0_32] : memref<1x8x32xf32, #tpu.memory_space<vmem>>, vector<1x8x32xf32>
      %67 = vector.shape_cast %66 : vector<1x8x32xf32> to vector<8x32xf32>
      %68 = arith.truncf %67 : vector<8x32xf32> to vector<8x32xbf16>
      %c0_33 = arith.constant 0 : index
      %c0_34 = arith.constant 0 : index
      %69 = vector.load %arg3[%c0_33, %c0_34] : memref<32x96xbf16, #tpu.memory_space<vmem>>, vector<32x96xbf16>
      %cst_35 = arith.constant dense<0.000000e+00> : vector<8x96xf32>
      %70 = tpu.matmul %68, %69, %cst_35 {dimension_numbers = #tpu.dot_dimension_numbers<[1], [0], [0], [1], [0, 0, 1, 1], [], []>} : vector<8x32xbf16>, vector<32x96xbf16>, vector<8x96xf32> -> vector<8x96xf32>
      %c0_36 = arith.constant 0 : index
      %c0_37 = arith.constant 0 : index
      %71 = vector.load %arg4[%c0_36, %c0_37] : memref<1x96xf32, #tpu.memory_space<vmem>>, vector<1x96xf32>
      %72 = vector.broadcast %71 : vector<1x96xf32> to vector<8x96xf32>
      %73 = arith.addf %70, %72 : vector<8x96xf32>
      %74 = vector.extract_strided_slice %73 {offsets = [0, 0], sizes = [8, 8], strides = [1, 1]} : vector<8x96xf32> to vector<8x8xf32>
      %75 = arith.truncf %74 : vector<8x8xf32> to vector<8x8xbf16>
      %c0_38 = arith.constant 0 : index
      %c0_39 = arith.constant 0 : index
      %c0_40 = arith.constant 0 : index
      %76 = vector.load %arg10[%c0_38, %c0_39, %c0_40] : memref<4x8x8xbf16, #tpu.memory_space<vmem>>, vector<1x8x8xbf16>
      %77 = vector.shape_cast %76 : vector<1x8x8xbf16> to vector<8x8xbf16>
      %78 = vector.shape_cast %75 : vector<8x8xbf16> to vector<1x8x8xbf16>
      tpu.vector_store %arg10[%c0_38, %c0_39, %c0_40], %78 {strides = array<i32>} : memref<4x8x8xbf16, #tpu.memory_space<vmem>>, vector<1x8x8xbf16>,
      %79 = vector.extract_strided_slice %73 {offsets = [0, 32], sizes = [8, 8], strides = [1, 1]} : vector<8x96xf32> to vector<8x8xf32>
      %80 = arith.truncf %79 : vector<8x8xf32> to vector<8x8xbf16>
      %c0_41 = arith.constant 0 : index
      %c0_42 = arith.constant 0 : index
      %c0_43 = arith.constant 0 : index
      %81 = vector.load %arg11[%c0_41, %c0_42, %c0_43] : memref<4x8x8xbf16, #tpu.memory_space<vmem>>, vector<1x8x8xbf16>
      %82 = vector.shape_cast %81 : vector<1x8x8xbf16> to vector<8x8xbf16>
      %83 = vector.shape_cast %80 : vector<8x8xbf16> to vector<1x8x8xbf16>
      tpu.vector_store %arg11[%c0_41, %c0_42, %c0_43], %83 {strides = array<i32>} : memref<4x8x8xbf16, #tpu.memory_space<vmem>>, vector<1x8x8xbf16>,
      %84 = vector.extract_strided_slice %73 {offsets = [0, 64], sizes = [8, 8], strides = [1, 1]} : vector<8x96xf32> to vector<8x8xf32>
      %85 = arith.truncf %84 : vector<8x8xf32> to vector<8x8xbf16>
      %c0_44 = arith.constant 0 : index
      %c0_45 = arith.constant 0 : index
      %c0_46 = arith.constant 0 : index
      %86 = vector.load %arg12[%c0_44, %c0_45, %c0_46] : memref<4x8x8xbf16, #tpu.memory_space<vmem>>, vector<1x8x8xbf16>
      %87 = vector.shape_cast %86 : vector<1x8x8xbf16> to vector<8x8xbf16>
      %88 = vector.shape_cast %85 : vector<8x8xbf16> to vector<1x8x8xbf16>
      tpu.vector_store %arg12[%c0_44, %c0_45, %c0_46], %88 {strides = array<i32>} : memref<4x8x8xbf16, #tpu.memory_space<vmem>>, vector<1x8x8xbf16>,
      %89 = vector.extract_strided_slice %73 {offsets = [0, 8], sizes = [8, 8], strides = [1, 1]} : vector<8x96xf32> to vector<8x8xf32>
      %90 = arith.truncf %89 : vector<8x8xf32> to vector<8x8xbf16>
      %c1 = arith.constant 1 : index
      %c0_47 = arith.constant 0 : index
      %c0_48 = arith.constant 0 : index
      %91 = vector.load %arg10[%c1, %c0_47, %c0_48] : memref<4x8x8xbf16, #tpu.memory_space<vmem>>, vector<1x8x8xbf16>
      %92 = vector.shape_cast %91 : vector<1x8x8xbf16> to vector<8x8xbf16>
      %93 = vector.shape_cast %90 : vector<8x8xbf16> to vector<1x8x8xbf16>
      tpu.vector_store %arg10[%c1, %c0_47, %c0_48], %93 {strides = array<i32>} : memref<4x8x8xbf16, #tpu.memory_space<vmem>>, vector<1x8x8xbf16>,
      %94 = vector.extract_strided_slice %73 {offsets = [0, 40], sizes = [8, 8], strides = [1, 1]} : vector<8x96xf32> to vector<8x8xf32>
      %95 = arith.truncf %94 : vector<8x8xf32> to vector<8x8xbf16>
      %c1_49 = arith.constant 1 : index
      %c0_50 = arith.constant 0 : index
      %c0_51 = arith.constant 0 : index
      %96 = vector.load %arg11[%c1_49, %c0_50, %c0_51] : memref<4x8x8xbf16, #tpu.memory_space<vmem>>, vector<1x8x8xbf16>
      %97 = vector.shape_cast %96 : vector<1x8x8xbf16> to vector<8x8xbf16>
      %98 = vector.shape_cast %95 : vector<8x8xbf16> to vector<1x8x8xbf16>
      tpu.vector_store %arg11[%c1_49, %c0_50, %c0_51], %98 {strides = array<i32>} : memref<4x8x8xbf16, #tpu.memory_space<vmem>>, vector<1x8x8xbf16>,
      %99 = vector.extract_strided_slice %73 {offsets = [0, 72], sizes = [8, 8], strides = [1, 1]} : vector<8x96xf32> to vector<8x8xf32>
      %100 = arith.truncf %99 : vector<8x8xf32> to vector<8x8xbf16>
      %c1_52 = arith.constant 1 : index
      %c0_53 = arith.constant 0 : index
      %c0_54 = arith.constant 0 : index
      %101 = vector.load %arg12[%c1_52, %c0_53, %c0_54] : memref<4x8x8xbf16, #tpu.memory_space<vmem>>, vector<1x8x8xbf16>
      %102 = vector.shape_cast %101 : vector<1x8x8xbf16> to vector<8x8xbf16>
      %103 = vector.shape_cast %100 : vector<8x8xbf16> to vector<1x8x8xbf16>
      tpu.vector_store %arg12[%c1_52, %c0_53, %c0_54], %103 {strides = array<i32>} : memref<4x8x8xbf16, #tpu.memory_space<vmem>>, vector<1x8x8xbf16>,
      %104 = vector.extract_strided_slice %73 {offsets = [0, 16], sizes = [8, 8], strides = [1, 1]} : vector<8x96xf32> to vector<8x8xf32>
      %105 = arith.truncf %104 : vector<8x8xf32> to vector<8x8xbf16>
      %c2 = arith.constant 2 : index
      %c0_55 = arith.constant 0 : index
      %c0_56 = arith.constant 0 : index
      %106 = vector.load %arg10[%c2, %c0_55, %c0_56] : memref<4x8x8xbf16, #tpu.memory_space<vmem>>, vector<1x8x8xbf16>
      %107 = vector.shape_cast %106 : vector<1x8x8xbf16> to vector<8x8xbf16>
      %108 = vector.shape_cast %105 : vector<8x8xbf16> to vector<1x8x8xbf16>
      tpu.vector_store %arg10[%c2, %c0_55, %c0_56], %108 {strides = array<i32>} : memref<4x8x8xbf16, #tpu.memory_space<vmem>>, vector<1x8x8xbf16>,
      %109 = vector.extract_strided_slice %73 {offsets = [0, 48], sizes = [8, 8], strides = [1, 1]} : vector<8x96xf32> to vector<8x8xf32>
      %110 = arith.truncf %109 : vector<8x8xf32> to vector<8x8xbf16>
      %c2_57 = arith.constant 2 : index
      %c0_58 = arith.constant 0 : index
      %c0_59 = arith.constant 0 : index
      %111 = vector.load %arg11[%c2_57, %c0_58, %c0_59] : memref<4x8x8xbf16, #tpu.memory_space<vmem>>, vector<1x8x8xbf16>
      %112 = vector.shape_cast %111 : vector<1x8x8xbf16> to vector<8x8xbf16>
      %113 = vector.shape_cast %110 : vector<8x8xbf16> to vector<1x8x8xbf16>
      tpu.vector_store %arg11[%c2_57, %c0_58, %c0_59], %113 {strides = array<i32>} : memref<4x8x8xbf16, #tpu.memory_space<vmem>>, vector<1x8x8xbf16>,
      %114 = vector.extract_strided_slice %73 {offsets = [0, 80], sizes = [8, 8], strides = [1, 1]} : vector<8x96xf32> to vector<8x8xf32>
      %115 = arith.truncf %114 : vector<8x8xf32> to vector<8x8xbf16>
      %c2_60 = arith.constant 2 : index
      %c0_61 = arith.constant 0 : index
      %c0_62 = arith.constant 0 : index
      %116 = vector.load %arg12[%c2_60, %c0_61, %c0_62] : memref<4x8x8xbf16, #tpu.memory_space<vmem>>, vector<1x8x8xbf16>
      %117 = vector.shape_cast %116 : vector<1x8x8xbf16> to vector<8x8xbf16>
      %118 = vector.shape_cast %115 : vector<8x8xbf16> to vector<1x8x8xbf16>
      tpu.vector_store %arg12[%c2_60, %c0_61, %c0_62], %118 {strides = array<i32>} : memref<4x8x8xbf16, #tpu.memory_space<vmem>>, vector<1x8x8xbf16>,
      %119 = vector.extract_strided_slice %73 {offsets = [0, 24], sizes = [8, 8], strides = [1, 1]} : vector<8x96xf32> to vector<8x8xf32>
      %120 = arith.truncf %119 : vector<8x8xf32> to vector<8x8xbf16>
      %c3 = arith.constant 3 : index
      %c0_63 = arith.constant 0 : index
      %c0_64 = arith.constant 0 : index
      %121 = vector.load %arg10[%c3, %c0_63, %c0_64] : memref<4x8x8xbf16, #tpu.memory_space<vmem>>, vector<1x8x8xbf16>
      %122 = vector.shape_cast %121 : vector<1x8x8xbf16> to vector<8x8xbf16>
      %123 = vector.shape_cast %120 : vector<8x8xbf16> to vector<1x8x8xbf16>
      tpu.vector_store %arg10[%c3, %c0_63, %c0_64], %123 {strides = array<i32>} : memref<4x8x8xbf16, #tpu.memory_space<vmem>>, vector<1x8x8xbf16>,
      %124 = vector.extract_strided_slice %73 {offsets = [0, 56], sizes = [8, 8], strides = [1, 1]} : vector<8x96xf32> to vector<8x8xf32>
      %125 = arith.truncf %124 : vector<8x8xf32> to vector<8x8xbf16>
      %c3_65 = arith.constant 3 : index
      %c0_66 = arith.constant 0 : index
      %c0_67 = arith.constant 0 : index
      %126 = vector.load %arg11[%c3_65, %c0_66, %c0_67] : memref<4x8x8xbf16, #tpu.memory_space<vmem>>, vector<1x8x8xbf16>
      %127 = vector.shape_cast %126 : vector<1x8x8xbf16> to vector<8x8xbf16>
      %128 = vector.shape_cast %125 : vector<8x8xbf16> to vector<1x8x8xbf16>
      tpu.vector_store %arg11[%c3_65, %c0_66, %c0_67], %128 {strides = array<i32>} : memref<4x8x8xbf16, #tpu.memory_space<vmem>>, vector<1x8x8xbf16>,
      %129 = vector.extract_strided_slice %73 {offsets = [0, 88], sizes = [8, 8], strides = [1, 1]} : vector<8x96xf32> to vector<8x8xf32>
      %130 = arith.truncf %129 : vector<8x8xf32> to vector<8x8xbf16>
      %c3_68 = arith.constant 3 : index
      %c0_69 = arith.constant 0 : index
      %c0_70 = arith.constant 0 : index
      %131 = vector.load %arg12[%c3_68, %c0_69, %c0_70] : memref<4x8x8xbf16, #tpu.memory_space<vmem>>, vector<1x8x8xbf16>
      %132 = vector.shape_cast %131 : vector<1x8x8xbf16> to vector<8x8xbf16>
      %133 = vector.shape_cast %130 : vector<8x8xbf16> to vector<1x8x8xbf16>
      tpu.vector_store %arg12[%c3_68, %c0_69, %c0_70], %133 {strides = array<i32>} : memref<4x8x8xbf16, #tpu.memory_space<vmem>>, vector<1x8x8xbf16>,
    } else {
    }
    %c8_i32 = arith.constant 8 : i32
    %3 = arith.muli %arg1, %c8_i32 : i32
    %4 = tpu.assume_multiple %3, 8 : i32
    %c0 = arith.constant 0 : index
    %5 = arith.index_cast %4 : i32 to index
    %c0_1 = arith.constant 0 : index
    %6 = vector.load %arg10[%c0, %5, %c0_1] : memref<4x8x8xbf16, #tpu.memory_space<vmem>>, vector<4x8x8xbf16>
    %c0_2 = arith.constant 0 : index
    %c0_3 = arith.constant 0 : index
    %c0_4 = arith.constant 0 : index
    %7 = vector.load %arg11[%c0_2, %c0_3, %c0_4] : memref<4x8x8xbf16, #tpu.memory_space<vmem>>, vector<4x8x8xbf16>
    %c0_5 = arith.constant 0 : index
    %c0_6 = arith.constant 0 : index
    %c0_7 = arith.constant 0 : index
    %8 = vector.load %arg12[%c0_5, %c0_6, %c0_7] : memref<4x8x8xbf16, #tpu.memory_space<vmem>>, vector<4x8x8xbf16>
    "tpu.trace_start"() <{level = 10 : i32, message = "hqd,hkd->hqk"}> : () -> ()
    %cst = arith.constant dense<0.000000e+00> : vector<4x8x8xf32>
    %9 = tpu.matmul %6, %7, %cst {dimension_numbers = #tpu.dot_dimension_numbers<[2], [2], [1], [1], [0, 0, 0, 1, 1, 1], [0], [0]>} : vector<4x8x8xbf16>, vector<4x8x8xbf16>, vector<4x8x8xf32> -> vector<4x8x8xf32>
    "tpu.trace_stop"() : () -> ()
    %cst_8 = arith.constant dense<0xFF800000> : vector<4x8xf32>
    %10 = vector.multi_reduction <maximumf>, %9, %cst_8 [2] : vector<4x8x8xf32> to vector<4x8xf32>
    %11 = vector.shape_cast %10 : vector<4x8xf32> to vector<4x8x1xf32>
    %12 = vector.broadcast %11 : vector<4x8x1xf32> to vector<4x8x8xf32>
    %13 = arith.subf %9, %12 : vector<4x8x8xf32>
    %14 = math.exp %13 : vector<4x8x8xf32>
    %cst_9 = arith.constant dense<0.000000e+00> : vector<4x8xf32>
    %15 = vector.multi_reduction <add>, %14, %cst_9 [2] : vector<4x8x8xf32> to vector<4x8xf32>
    %16 = vector.shape_cast %15 : vector<4x8xf32> to vector<4x8x1xf32>
    %17 = tpu.reciprocal %16 {approx = true} : vector<4x8x1xf32> -> vector<4x8x1xf32>
    %18 = vector.broadcast %17 : vector<4x8x1xf32> to vector<4x8x8xf32>
    %19 = arith.mulf %14, %18 : vector<4x8x8xf32>
    %20 = arith.truncf %19 : vector<4x8x8xf32> to vector<4x8x8xbf16>
    "tpu.trace_start"() <{level = 10 : i32, message = "hqk,hkd->hqd"}> : () -> ()
    %cst_10 = arith.constant dense<0.000000e+00> : vector<4x8x8xf32>
    %21 = tpu.matmul %20, %8, %cst_10 {dimension_numbers = #tpu.dot_dimension_numbers<[2], [1], [1], [2], [0, 0, 0, 1, 1, 2], [0], [0]>} : vector<4x8x8xbf16>, vector<4x8x8xbf16>, vector<4x8x8xf32> -> vector<4x8x8xf32>
    "tpu.trace_stop"() : () -> ()
    %22 = vector.extract_strided_slice %21 {offsets = [0, 0, 0], sizes = [1, 8, 8], strides = [1, 1, 1]} : vector<4x8x8xf32> to vector<1x8x8xf32>
    %23 = vector.shape_cast %22 : vector<1x8x8xf32> to vector<8x8xf32>
    %24 = vector.extract_strided_slice %21 {offsets = [1, 0, 0], sizes = [1, 8, 8], strides = [1, 1, 1]} : vector<4x8x8xf32> to vector<1x8x8xf32>
    %25 = vector.shape_cast %24 : vector<1x8x8xf32> to vector<8x8xf32>
    %26 = vector.extract_strided_slice %21 {offsets = [2, 0, 0], sizes = [1, 8, 8], strides = [1, 1, 1]} : vector<4x8x8xf32> to vector<1x8x8xf32>
    %27 = vector.shape_cast %26 : vector<1x8x8xf32> to vector<8x8xf32>
    %28 = vector.extract_strided_slice %21 {offsets = [3, 0, 0], sizes = [1, 8, 8], strides = [1, 1, 1]} : vector<4x8x8xf32> to vector<1x8x8xf32>
    %29 = vector.shape_cast %28 : vector<1x8x8xf32> to vector<8x8xf32>
    %30 = tpu.concatenate %23, %25, %27, %29 in 1 : vector<8x8xf32>, vector<8x8xf32>, vector<8x8xf32>, vector<8x8xf32> -> vector<8x32xf32>
    %c0_11 = arith.constant 0 : index
    %31 = arith.index_cast %4 : i32 to index
    %c0_12 = arith.constant 0 : index
    %32 = vector.load %arg2[%c0_11, %31, %c0_12] : memref<1x8x32xf32, #tpu.memory_space<vmem>>, vector<1x8x32xf32>
    %33 = vector.shape_cast %32 : vector<1x8x32xf32> to vector<8x32xf32>
    %34 = arith.truncf %30 : vector<8x32xf32> to vector<8x32xbf16>
    %c0_13 = arith.constant 0 : index
    %c0_14 = arith.constant 0 : index
    %35 = vector.load %arg5[%c0_13, %c0_14] : memref<32x32xbf16, #tpu.memory_space<vmem>>, vector<32x32xbf16>
    %cst_15 = arith.constant dense<0.000000e+00> : vector<8x32xf32>
    %36 = tpu.matmul %34, %35, %cst_15 {dimension_numbers = #tpu.dot_dimension_numbers<[1], [0], [0], [1], [0, 0, 1, 1], [], []>} : vector<8x32xbf16>, vector<32x32xbf16>, vector<8x32xf32> -> vector<8x32xf32>
    %c0_16 = arith.constant 0 : index
    %c0_17 = arith.constant 0 : index
    %37 = vector.load %arg6[%c0_16, %c0_17] : memref<1x32xf32, #tpu.memory_space<vmem>>, vector<1x32xf32>
    %38 = vector.broadcast %37 : vector<1x32xf32> to vector<8x32xf32>
    %39 = arith.addf %36, %38 : vector<8x32xf32>
    %40 = arith.addf %39, %33 : vector<8x32xf32>
    %cst_18 = arith.constant dense<0.000000e+00> : vector<8xf32>
    %41 = vector.multi_reduction <add>, %40, %cst_18 [1] : vector<8x32xf32> to vector<8xf32>
    %42 = vector.shape_cast %41 : vector<8xf32> to vector<8x1xf32>
    %cst_19 = arith.constant 3.200000e+01 : f32
    %43 = vector.broadcast %cst_19 : f32 to vector<8x1xf32>
    %44 = arith.divf %42, %43 : vector<8x1xf32>
    %45 = vector.broadcast %44 : vector<8x1xf32> to vector<8x32xf32>
    %46 = arith.subf %40, %45 : vector<8x32xf32>
    %47 = arith.mulf %46, %46 : vector<8x32xf32>
    %cst_20 = arith.constant dense<0.000000e+00> : vector<8xf32>
    %48 = vector.multi_reduction <add>, %47, %cst_20 [1] : vector<8x32xf32> to vector<8xf32>
    %49 = vector.shape_cast %48 : vector<8xf32> to vector<8x1xf32>
    %cst_21 = arith.constant 3.200000e+01 : f32
    %50 = vector.broadcast %cst_21 : f32 to vector<8x1xf32>
    %51 = arith.divf %49, %50 : vector<8x1xf32>
    %cst_22 = arith.constant 9.99999996E-13 : f32
    %52 = vector.broadcast %cst_22 : f32 to vector<8x1xf32>
    %53 = arith.addf %51, %52 : vector<8x1xf32>
    %54 = math.rsqrt %53 : vector<8x1xf32>
    %55 = vector.broadcast %54 : vector<8x1xf32> to vector<8x32xf32>
    %56 = arith.mulf %46, %55 : vector<8x32xf32>
    %c0_23 = arith.constant 0 : index
    %c0_24 = arith.constant 0 : index
    %57 = vector.load %arg7[%c0_23, %c0_24] : memref<1x32xf32, #tpu.memory_space<vmem>>, vector<1x32xf32>
    %58 = vector.broadcast %57 : vector<1x32xf32> to vector<8x32xf32>
    %59 = arith.mulf %56, %58 : vector<8x32xf32>
    %c0_25 = arith.constant 0 : index
    %c0_26 = arith.constant 0 : index
    %60 = vector.load %arg8[%c0_25, %c0_26] : memref<1x32xf32, #tpu.memory_space<vmem>>, vector<1x32xf32>
    %61 = vector.broadcast %60 : vector<1x32xf32> to vector<8x32xf32>
    %62 = arith.addf %59, %61 : vector<8x32xf32>
    %c0_27 = arith.constant 0 : index
    %c0_28 = arith.constant 0 : index
    %c0_29 = arith.constant 0 : index
    %63 = vector.load %arg9[%c0_27, %c0_28, %c0_29] : memref<1x8x32xf32, #tpu.memory_space<vmem>>, vector<1x8x32xf32>
    %64 = vector.shape_cast %63 : vector<1x8x32xf32> to vector<8x32xf32>
    %65 = vector.shape_cast %62 : vector<8x32xf32> to vector<1x8x32xf32>
    tpu.vector_store %arg9[%c0_27, %c0_28, %c0_29], %65 {strides = array<i32>} : memref<1x8x32xf32, #tpu.memory_space<vmem>>, vector<1x8x32xf32>,
    return
  }
  func.func @transform_0(%arg0: i32, %arg1: i32) -> (i32, i32, i32) {
    %c0_i32 = arith.constant 0 : i32
    %c0_i32_0 = arith.constant 0 : i32
    %c0_i32_1 = arith.constant 0 : i32
    return %arg0, %c0_i32, %c0_i32_0 : i32, i32, i32
  }
  func.func @transform_1(%arg0: i32, %arg1: i32) -> (i32, i32) {
    %c0_i32 = arith.constant 0 : i32
    %c0_i32_0 = arith.constant 0 : i32
    %c0_i32_1 = arith.constant 0 : i32
    return %c0_i32, %c0_i32_0 : i32, i32
  }
  func.func @transform_2(%arg0: i32, %arg1: i32) -> (i32, i32) {
    %c0_i32 = arith.constant 0 : i32
    %c0_i32_0 = arith.constant 0 : i32
    %c0_i32_1 = arith.constant 0 : i32
    return %c0_i32, %c0_i32_0 : i32, i32
  }
  func.func @transform_3(%arg0: i32, %arg1: i32) -> (i32, i32) {
    %c0_i32 = arith.constant 0 : i32
    %c0_i32_0 = arith.constant 0 : i32
    %c0_i32_1 = arith.constant 0 : i32
    return %c0_i32, %c0_i32_0 : i32, i32
  }
  func.func @transform_4(%arg0: i32, %arg1: i32) -> (i32, i32) {
    %c0_i32 = arith.constant 0 : i32
    %c0_i32_0 = arith.constant 0 : i32
    %c0_i32_1 = arith.constant 0 : i32
    return %c0_i32, %c0_i32_0 : i32, i32
  }
  func.func @transform_5(%arg0: i32, %arg1: i32) -> (i32, i32) {
    %c0_i32 = arith.constant 0 : i32
    %c0_i32_0 = arith.constant 0 : i32
    %c0_i32_1 = arith.constant 0 : i32
    return %c0_i32, %c0_i32_0 : i32, i32
  }
  func.func @transform_6(%arg0: i32, %arg1: i32) -> (i32, i32) {
    %c0_i32 = arith.constant 0 : i32
    %c0_i32_0 = arith.constant 0 : i32
    %c0_i32_1 = arith.constant 0 : i32
    return %c0_i32, %c0_i32_0 : i32, i32
  }
  func.func @transform_7(%arg0: i32, %arg1: i32) -> (i32, i32, i32) {
    %c0_i32 = arith.constant 0 : i32
    %c0_i32_0 = arith.constant 0 : i32
    return %arg0, %arg1, %c0_i32 : i32, i32, i32
  }
}

</mosaic_0001>

<bundles_post_ra>
// kernel: tpu_custom_call.1
= control target key start
LH: loop header
LB: loop body
LE: loop exit
PB: predicated region body
PF: predicated region fallthrough
CT: control target
= control target key end

     0   :  { %12 = vsyncpa [#allocation6], 0  ;;  %s1982_s0 = inlined_call_operand.hbm [shape: f32[2,8,32], index: 0, kind: input, shape index: {}]   ;;  %s1983_s1 = inlined_call_operand.hbm [shape: bf16[32,96], index: 1, kind: input, shape index: {}]   ;;  %s1984_s2 = inlined_call_operand.vmem [shape: f32[1,96], index: 2, kind: input, shape index: {}]   ;;  %s1985_s3 = inlined_call_operand.hbm [shape: bf16[32,32], index: 3, kind: input, shape index: {}]   ;;  %s1986_s4 = inlined_call_operand.vmem [shape: f32[1,32], index: 4, kind: input, shape index: {}]   ;;  %s1987_s5 = inlined_call_operand.vmem [shape: f32[1,32], index: 5, kind: input, shape index: {}]   ;;  %s1988_s6 = inlined_call_operand.vmem [shape: f32[1,32], index: 6, kind: input, shape index: {}]   ;;  %s1989_s7 = inlined_call_operand.hbm [shape: f32[2,8,32], index: 7, kind: output, shape index: {}]  }
   0x1   :  { %14 = vsyncpa [#allocation6 + $0x1], 0 }
   0x2   :  { %15 = vsyncpa [#allocation9], 0 }
   0x3   :  { %16 = vsyncpa [#allocation7], 0 }
   0x4   :  { %18 = vsyncpa [#allocation7 + $0x1], 0  ;;  %s1623_s24 = smov 0   ;;  %s1625_s25 = smov 0  }
   0x5   :  { %s1627_s26 = smov 0   ;;  %s1629_s27 = smov 0  }
   0x6   :  { %s1631_s28 = smov 0   ;;  %s1633_s29 = smov 0  }
   0x7 LB: > { %1996 = sst [smem:[#allocation15_spill]] %s1539_s24  ;;  %s1141_s30 = sadd.s32 4294967295, %s1559_s29   ;;  %s1559_s29 = sphi %s1633_s29, %s24_s29   ;;  %s1555_s28 = sphi %s1631_s28, %s2017_s28   ;;  %s1551_s27 = sphi %s1629_s27, %s2016_s27   ;;  %s1547_s26 = sphi %s1627_s26, %s2015_s26   ;;  %s1543_s25 = sphi %s1625_s25, %s2014_s25   ;;  %s1539_s24 = sphi %s1623_s24, %s2013_s24  }
   0x8   : > { %s1142_s8 = sadd.s32 4294967294, %s1559_s29   ;;  %p56_p0 = scmp.ne.s32.totalorder %s1543_s25, %s1539_s24 }
   0x9   : > { %p1657_p1 = scmp.eq.s32.totalorder %s1141_s30, 0  ;;  %p1661_p2 = scmp.eq.s32.totalorder %s1141_s30, 1 }
   0xa   : > { %p214_p3 = scmp.eq.s32.totalorder %s1142_s8, 1  ;;  %p1143_p5 = scmp.ge.s32.totalorder %s1559_s29, 1 }
   0xb   : > { %s1997_s9 = scalar_select %p1657_p1, 1, 0 }
   0xc   : > { %p1667_p4 = por %p1657_p1, %p56_p0  ;;  %p1672_p6 = por %p214_p3, %p56_p0 }
   0xd   : > { %p221_p7 = scmp.lt.s32.totalorder %s1559_s29, 3  ;;  %s1561_s14 = smov [#allocation8]  }
   0xe   : > { %s1999_s11 = scalar_select %p1667_p4, 1, 0 }
   0xf   : > { %s2000_s12 = scalar_select %p1672_p6, 1, 0 }
  0x10   : > { %p1677_p8 = pnand %p1143_p5, %p221_p7  ;;  %s233_s15 = sshll.u32 %s1561_s14, 4  ;;  %s1681_s15 = int_to_ptr.vmem [resolvable:$true] %s233_s15 }
  0x11   : > { %2001 = sst [smem:[#allocation16_spill]] %s2000_s12  ;;  %s1562_s17 = smov [#allocation10]  }
  0x12   : > { %p1276_p9 = pneg %p1677_p8  ;;  %s249_s18 = sshll.u32 %s1562_s17, 4  ;;  %s1692_s18 = int_to_ptr.vmem [resolvable:$true] %s249_s18 }
  0x13   : > { %s1387_s21 = scalar_lea.hbm %s1983_s1, 256 }
  0x14   : > { %p1688_p11 = pnand %p1276_p9, %p1657_p1  ;;  %p1388_p12 = scmp.ne.s32.totalorder %s1983_s1, %s1387_s21 }
  0x15   : > { %p1394_p5 = scmp.lt.u32.totalorder %s1387_s21, %s1983_s1 }
  0x16   : > { %p1389_p13 = pneg %p1688_p11 }
  0x18   : > { %p1390_p0 = pnand %p1389_p13, %p1388_p12 }
  0x1a   : > { %p1391_p3 = pneg %p1390_p0 }
  0x1c   : > { %p1396_p7 = pnand %p1394_p5, %p1391_p3 }
  0x1e   : > { %1399 = shalt.err (!%p1396_p7)
}
  0x1f   : > { %s1400_s14 = scalar_lea.vmem %s1681_s15, 256  ;;  %p1408_p1 = scmp.lt.s32.totalorder %s1681_s15, %s1681_s15 }
  0x20   : > { %p1401_p9 = scmp.ne.s32.totalorder %s1681_s15, %s1400_s14  ;;  %p1409_p12 = scmp.lt.s32.totalorder %s1400_s14, %s1400_s14 }
  0x22   : > { %p1403_p10 = pnand %p1401_p9, %p1389_p13  ;;  %p1410_p0 = por %p1409_p12, %p1408_p1 }
  0x24   : > { %p1404_p6 = pneg %p1403_p10 }
  0x26   : > { %p1411_p4 = pnand %p1410_p0, %p1404_p6 }
  0x28   : > { %1414 = shalt.err (!%p1411_p4)
}
  0x29   : > { %s1563_s17 = smov 64   ;;  %s1564_s19 = smov 4  }
  0x2a   : > { %1279 = dma.hbm_to_vmem [thread:$0]  (!%p1688_p11), %s1983_s1, 256, %s1681_s15, [#allocation9], %s1563_s17, %s1563_s17, %s1564_s19  }
  0x2b   : > { %s1415_s30 = scalar_lea.hbm %s1985_s3, 256 }
  0x2c   : > { %p1416_p1 = scmp.ne.s32.totalorder %s1985_s3, %s1415_s30  ;;  %p1422_p10 = scmp.lt.u32.totalorder %s1415_s30, %s1985_s3 }
  0x2e   : > { %p1418_p4 = pnand %p1416_p1, %p1389_p13 }
  0x30   : > { %p1419_p6 = pneg %p1418_p4 }
  0x32   : > { %p1424_p3 = pnand %p1422_p10, %p1419_p6 }
  0x34   : > { %1427 = shalt.err (!%p1424_p3)
}
  0x35   : > { %s1428_s15 = scalar_lea.vmem %s1692_s18, 256  ;;  %p1436_p12 = scmp.lt.s32.totalorder %s1692_s18, %s1692_s18 }
  0x36   : > { %p1429_p5 = scmp.ne.s32.totalorder %s1692_s18, %s1428_s15  ;;  %p1437_p0 = scmp.lt.s32.totalorder %s1428_s15, %s1428_s15 }
  0x38   : > { %p1431_p7 = pnand %p1429_p5, %p1389_p13  ;;  %p1438_p1 = por %p1437_p0, %p1436_p12 }
  0x3a   : > { %p1432_p9 = pneg %p1431_p7 }
  0x3c   : > { %p1439_p4 = pnand %p1438_p1, %p1432_p9 }
  0x3e   : > { %1442 = shalt.err (!%p1439_p4)
}
  0x3f   : > { %1282 = dma.hbm_to_vmem [thread:$0]  (!%p1688_p11), %s1985_s3, 256, %s1692_s18, [#allocation9], %s1563_s17, %s1563_s17, %s1564_s19  }
  0x40   : > { %s36_s20 = sadd.s32 1, %s1555_s28  ;;  %s43_s21 = sadd.s32 1, %s1547_s26 }
  0x41   : > { %p38_p13 = scmp.ge.s32.totalorder %s36_s20, 2  ;;  %p50_p6 = scmp.ne.s32.totalorder %s1547_s26, %s1543_s25 }
  0x42   : > { %p51_p10 = scmp.eq.s32.totalorder %s1559_s29, 0  ;;  %p1293_p3 = scmp.lt.s32.totalorder %s1559_s29, 2 }
  0x43   : > { %s2019_s20 = smov (%p38_p13, %s36_s20), 0  ;;  %p1756_p7 = por %p1661_p2, %p50_p6 }
  0x44   : > { %p52_p5 = por %p51_p10, %p50_p6  ;;  %s40_s22 = ssub.s32 %s1555_s28, %s2019_s20 }
  0x45   : > { %s2004_s16 = scalar_select %p1756_p7, 1, 0 }
  0x46   : > { %s272_s23 = sand.u32 1, %s1547_s26   ;;  %p41_p9 = scmp.eq.s32.totalorder %s40_s22, 0 }
  0x47   : > { %s1147_s18 = sshll.u32 %s272_s23, 3  ;;  %s1148_s17 = sshll.u32 %s1555_s28, 7 }
  0x48   : > { %s1765_s19 = scalar_select %p41_p9, %s1547_s26, %s43_s21  }
  0x49   : > { %s1770_s14 = scalar_lea.hbm %s1982_s0, %s1148_s17  ;;  %s276_s10 = scalar_lea.vmem [#allocation5], %s1147_s18 }
  0x4a   : > { %s283_s15 = sshll.u32 %s276_s10, 4  ;;  %p1774_p2 = pnand %p1293_p3, %p52_p5  ;;  %s1778_s15 = int_to_ptr.vmem [resolvable:$true] %s283_s15 }
  0x4b   : > { %s273_s12 = scalar_lea.sflag [#allocation6], %s272_s23  ;;  %s1443_s21 = scalar_lea.hbm %s1770_s14, 128 }
  0x4c   : > { %p1444_p11 = scmp.ne.s32.totalorder %s1770_s14, %s1443_s21  ;;  %p1445_p12 = pneg %p1774_p2 }
  0x4d   : > { %s1448_s17 = scalar_lea.hbm %s1982_s0, 256  ;;  %p1449_p4 = scmp.lt.u32.totalorder %s1770_s14, %s1982_s0 }
  0x4e   : > { %p1446_p0 = pnand %p1445_p12, %p1444_p11  ;;  %p1450_p13 = scmp.lt.u32.totalorder %s1448_s17, %s1443_s21 }
  0x4f   : > { %p1452_p10 = scmp.lt.u32.totalorder %s1443_s21, %s1770_s14 }
  0x50   : > { %p1447_p1 = pneg %p1446_p0  ;;  %p1451_p6 = por %p1450_p13, %p1449_p4 }
  0x52   : > { %p1453_p3 = por %p1452_p10, %p1451_p6 }
  0x54   : > { %p1454_p5 = pnand %p1453_p3, %p1447_p1 }
  0x56   : > { %1457 = shalt.err (!%p1454_p5)
}
  0x57   : > { %s1458_s23 = scalar_lea.vmem %s1778_s15, 128  ;;  %s1565_s10 = smov [#allocation5]  }
  0x58   : > { %p1459_p9 = scmp.ne.s32.totalorder %s1778_s15, %s1458_s23  ;;  %s1463_s22 = sshll.u32 %s1565_s10, 4  ;;  %s1464_s22 = int_to_ptr.vmem [resolvable:$false] %s1463_s22 }
  0x59   : > { %s1465_s18 = scalar_lea.vmem %s1464_s22, 256  ;;  %p1466_p7 = scmp.lt.s32.totalorder %s1778_s15, %s1464_s22 }
  0x5a   : > { %p1461_p11 = pnand %p1459_p9, %p1445_p12  ;;  %p1467_p4 = scmp.lt.s32.totalorder %s1465_s18, %s1458_s23 }
  0x5c   : > { %p1462_p0 = pneg %p1461_p11  ;;  %p1468_p13 = por %p1467_p4, %p1466_p7 }
  0x5e   : > { %p1469_p6 = pnand %p1468_p13, %p1462_p0 }
  0x60   : > { %1472 = shalt.err (!%p1469_p6)
}
  0x61   : > { %1286 = dma.hbm_to_vmem [thread:$0]  (!%p1774_p2), %s1770_s14, 128, %s1778_s15, %s273_s12  }
  0x62   : > { %292 = sbr.rel (%p1677_p8) target bundleno = 1881 (0x759), region = 48  ;;  %s1808_s21 = sand.u32 (!%p1677_p8), 1, %s1543_s25  }
  0x63   : > { %s1150_s17 = sshll.u32 (!%p1677_p8), %s1808_s21, 3  ;;  %s295_s30 = scalar_lea.sflag (!%p1677_p8), [#allocation6], %s1808_s21 }
  0x64   : > { %s298_s8 = scalar_lea.vmem (!%p1677_p8), [#allocation5], %s1150_s17  ;;  %p2006_p7 = scmp.ne.s32.totalorder (!%p1677_p8), %s1999_s11, 0 }
  0x69   : > { %1526 = dma.done.wait (%p2006_p7), %s295_s30, 128  }
  0x6a   : > { %1528 = vsyncadd (%p2006_p7), %s295_s30, 4294967168  ;;  %p2007_p2 = scmp.ne.s32.totalorder %s1997_s9, 0 }
  0x6c   : > { %1530 = dma.done.wait (%p2007_p2), [#allocation9], 512  }
  0x6d   : > { %1532 = vsyncadd (%p2007_p2), [#allocation9], 4294966784  ;;  %v1566_v0 = vmov 0.0   ;;  %vm1567_vm0 = vmmov 0   ;;  %v1365_v1 = vld [vmem:[#allocation8] sm:$0xff]   ;;  %v1366_v2 = vld [vmem:[#allocation8 + $0x8] sm:$0xff]  }
  0x6e   : > { %1200 = vmatprep.subr.bf16.mxu0 %v1566_v0  ;;  %1204 = vmatprep.mubr.msk.bf16.mxu0 %vm1567_vm0, %v1566_v0  ;;  %v1828_v3 = vld [vmem:[%s298_s8] sm:$0xff]  ;;  %vm367_vm1 = vcmask 261120   ;;  %v1154_v5 = vld [vmem:[%s1984_s2] ss:$0 sm:$0xff]  ;;  %vm412_vm2 = vcmask 60416   ;;  %s1568_s13 = smov 80  }
  0x6f   : > { %1208 = vmatprep.subr.bf16.mxu1 %v1566_v0  ;;  %1210 = vmatprep.mubr.msk.bf16.mxu1 %vm1567_vm0, %v1566_v0  ;;  %v343_v4 = vpack.c.bf16 %v1828_v3, %v1828_v3  ;;  %s1569_s14 = smov 96   ;;  %s1570_s15 = smov 120   ;;  %vm487_vm3 = vcmask 64512   ;;  %vm723_vm4 = vcmask 1043456   ;;  %vm918_vm5 = vcmask 130048  }
  0x70   : > { %1201 = vmatpush3.bf16.msra.mxu0 %v1365_v1  ;;  %s1571_s24 = smov 88   ;;  %s1572_s12 = smov 112   ;;  %vm920_vm6 = vcmask 195584  }
  0x71   : > { %1202 = vmatprep.subr.bf16.mxu0 %v1566_v0  ;;  %s1573_s23 = smov 72   ;;  %s1574_s10 = smov 104  }
  0x72   : > { %s1575_s22 = smov 56   ;;  %s1576_s18 = smov 64  }
  0x73   : > { %s1577_s30 = smov 48   ;;  %s1578_s8 = smov 40  }
  0x74   : > { %1203 = vmatpush3.bf16.msra.mxu0 %v1366_v2  ;;  %s1579_s9 = smov 8   ;;  %s1580_s11 = smov 24  }
  0x75   : > { %1214 = vmatprep.subr.bf16.mxu0 %v1566_v0  ;;  %p2008_p12 = scmp.ne.s32.totalorder %s2004_s16, 0 }
  0x77   : > { %1205 = vmatmul.mubr.msk.bf16.vlgmr.msra.gmra.mrb[0].mxu0 %vm367_vm1, %v343_v4 }
  0x78   : > { %1216 = vmatprep.mubr.msk.bf16.mxu0 %vm1567_vm0, %v1566_v0 }
 0x14a   : > { %v405_v6 = vpop.f32.mrb[0].mxu0 }
 0x14b   : > { %v406_v7 = vadd.f32 %v1154_v5, %v405_v6  ;;  %v1206_v8 = vpop.f32.mrb[1].mxu0 }
 0x14c   : > { %v408_v9 = vpop.f32.mrb[2].mxu0 }
 0x14d   : > { %v1840_v10 = vpack.c.bf16 %v406_v7, %v406_v7  ;;  %v1207_v11 = vpop.f32.mrb[3].mxu0 }
 0x14f   : > { %445 = vrot.lane.b32.xlu1 %v1840_v10, %s1568_s13  ;;  %417 = vrot.lane.b32.xlu0 %v1840_v10, %s1569_s14  ;;  %413 = vst.msk [vmem:[#allocation2] sm:$0xf] %vm412_vm2, %v1840_v10  ;;  %s1581_s13 = smov 16  }
 0x153   : > { %425 = vrot.lane.b32.xlu1 %v1840_v10, %s1570_s15  ;;  %430 = vrot.lane.b32.xlu0 %v1840_v10, %s1571_s24 }
 0x156   : > { %v475_v24 = vld [vmem:[#allocation2] sm:$0xf] }
 0x157   : > { %440 = vrot.lane.b32.xlu1 %v1840_v10, %s1572_s12  ;;  %460 = vrot.lane.b32.xlu0 %v1840_v10, %s1573_s23 }
 0x15b   : > { %455 = vrot.lane.b32.xlu0 %v1840_v10, %s1574_s10 }
 0x1c1   : > { %v446_v12 = vpop.permute.xlu1 %445  ;;  %v418_v13 = vpop.permute.xlu0 %417 }
 0x1c2   : > { %449 = vst.msk [vmem:[#allocation3 + $0x8] sm:$0xf] %vm412_vm2, %v446_v12  ;;  %420 = vst.msk [vmem:[#allocation3] sm:$0xf] %vm412_vm2, %v418_v13 }
 0x1c5   : > { %v426_v14 = vpop.permute.xlu1 %425  ;;  %v431_v15 = vpop.permute.xlu0 %430 }
 0x1c6   : > { %429 = vst.msk [vmem:[#allocation2 + $0x4] sm:$0xf] %vm412_vm2, %v426_v14  ;;  %434 = vst.msk [vmem:[#allocation3 + $0x4] sm:$0xf] %vm412_vm2, %v431_v15 }
 0x1c9   : > { %v441_v16 = vpop.permute.xlu1 %440  ;;  %v461_v17 = vpop.permute.xlu0 %460  ;;  %v479_v18 = vld [vmem:[#allocation3] sm:$0xf]  ;;  %v481_v23 = vld [vmem:[#allocation3 + $0x8] sm:$0xf] }
 0x1ca   : > { %444 = vst.msk [vmem:[#allocation2 + $0x8] sm:$0xf] %vm412_vm2, %v441_v16  ;;  %464 = vst.msk [vmem:[#allocation3 + $0xc] sm:$0xf] %vm412_vm2, %v461_v17  ;;  %v492_v19 = vsel %vm487_vm3, %v479_v18, 0  ;;  %v584_v25 = vsel %vm487_vm3, %v481_v23, 0 }
 0x1cb   : > { %1209 = vmatpush3.bf16.xpose.msra.mxu1 %v492_v19 }
 0x1cc   : > { %1220 = vmatprep.subr.bf16.mxu1 %v1566_v0 }
 0x1cd   : > { %v456_v20 = vpop.permute.xlu0 %455  ;;  %v480_v21 = vld [vmem:[#allocation3 + $0x4] sm:$0xf]  ;;  %v476_v27 = vld [vmem:[#allocation2 + $0x4] sm:$0xf] }
 0x1ce   : > { %459 = vst.msk [vmem:[#allocation2 + $0xc] sm:$0xf] %vm412_vm2, %v456_v20  ;;  %v538_v22 = vsel %vm487_vm3, %v480_v21, 0 }
 0x1cf   : > { %1215 = vmatpush3.bf16.xpose.msra.mxu0 %v538_v22 }
 0x1d0   : > { %1226 = vmatprep.subr.bf16.mxu0 %v1566_v0 }
 0x1d1   : > { %v482_v26 = vld [vmem:[#allocation3 + $0xc] sm:$0xf]  ;;  %v477_v29 = vld [vmem:[#allocation2 + $0x8] sm:$0xf] }
 0x1d2   : > { %1211 = vmatmul.mubr.msk.bf16.vlgmr.msra.gmra.mrb[0].mxu1 %vm487_vm3, %v475_v24  ;;  %v630_v28 = vsel %vm487_vm3, %v482_v26, 0 }
 0x1d3   : > { %1221 = vmatpush3.bf16.xpose.msra.mxu1 %v584_v25  ;;  %1222 = vmatprep.mubr.msk.bf16.mxu1 %vm1567_vm0, %v1566_v0 }
 0x1d4   : > { %1232 = vmatprep.subr.bf16.mxu1 %v1566_v0 }
 0x1d5   : > { %v478_v30 = vld [vmem:[#allocation2 + $0xc] sm:$0xf] }
 0x1d6   : > { %1217 = vmatmul.mubr.msk.bf16.vlgmr.msra.gmra.mrb[4].mxu0 %vm487_vm3, %v476_v27 }
 0x1d7   : > { %1227 = vmatpush3.bf16.xpose.msra.mxu0 %v630_v28  ;;  %1228 = vmatprep.mubr.msk.bf16.mxu0 %vm1567_vm0, %v1566_v0 }
 0x1d8   : > { %1238 = vmatprep.subr.bf16.mxu0 %v1566_v0 }
 0x1da   : > { %1223 = vmatmul.mubr.msk.bf16.vlgmr.msra.gmra.mrb[4].mxu1 %vm487_vm3, %v477_v29 }
 0x1db   : > { %1234 = vmatprep.mubr.msk.bf16.mxu1 %vm1567_vm0, %v1566_v0 }
 0x1de   : > { %1229 = vmatmul.mubr.msk.bf16.vlgmr.msra.gmra.mrb[8].mxu0 %vm487_vm3, %v478_v30 }
 0x1df   : > { %1240 = vmatprep.mubr.msk.bf16.mxu0 %vm1567_vm0, %v1566_v0 }
 0x2a5   : > { %v528_v31 = vpop.f32.mrb[0].mxu1 }
 0x2a6   : > { %v1212_v32 = vpop.f32.mrb[1].mxu1  ;;  %v672_v33 = vsel %vm487_vm3, %v528_v31, -inf }
 0x2a7   : > { %673 = vmax.xlane.f32.xlu1 %v672_v33  ;;  %v531_v34 = vpop.f32.mrb[2].mxu1 }
 0x2a8   : > { %v1213_v35 = vpop.f32.mrb[3].mxu1 }
 0x2a9   : > { %v574_v36 = vpop.f32.mrb[4].mxu0 }
 0x2aa   : > { %v1218_v37 = vpop.f32.mrb[5].mxu0  ;;  %v675_v38 = vsel %vm487_vm3, %v574_v36, -inf }
 0x2ab   : > { %676 = vmax.xlane.f32.xlu0 %v675_v38  ;;  %v577_v39 = vpop.f32.mrb[6].mxu0  ;;  %v1367_v37 = vld [vmem:[#allocation10] sm:$0xff]  }
 0x2ac   : > { %v1219_v40 = vpop.f32.mrb[7].mxu0  ;;  %v1368_v39 = vld [vmem:[#allocation10 + $0x8] sm:$0xff]  }
 0x2ad   : > { %v620_v41 = vpop.f32.mrb[4].mxu1 }
 0x2ae   : > { %v1224_v42 = vpop.f32.mrb[5].mxu1  ;;  %v678_v43 = vsel %vm487_vm3, %v620_v41, -inf }
 0x2af   : > { %v623_v44 = vpop.f32.mrb[6].mxu1  ;;  %679 = vmax.xlane.f32.xlu0 %v678_v43 }
 0x2b0   : > { %v1225_v45 = vpop.f32.mrb[7].mxu1 }
 0x2b1   : > { %v666_v46 = vpop.f32.mrb[8].mxu0 }
 0x2b2   : > { %v1230_v47 = vpop.f32.mrb[9].mxu0  ;;  %v681_v48 = vsel %vm487_vm3, %v666_v46, -inf }
 0x2b3   : > { %682 = vmax.xlane.f32.xlu1 %v681_v48  ;;  %v669_v49 = vpop.f32.mrb[10].mxu0 }
 0x2b4   : > { %v1231_v50 = vpop.f32.mrb[11].mxu0 }
 0x2c4   : > { %435 = vrot.lane.b32.xlu1 %v1840_v10, %s1575_s22  ;;  %s1174_s22 = sshll.u32 %s1551_s27, 7  ;;  %s1582_s27 = smov [#allocation11]  }
 0x2c5   : > { %421 = vrot.lane.b32.xlu0 %v1840_v10, %s1576_s18  ;;  %s336_s18 = scalar_lea.vmem [#allocation11], %s1150_s17  ;;  %s1477_s17 = sshll.u32 %s1582_s27, 4  ;;  %s1478_s17 = int_to_ptr.vmem [resolvable:$false] %s1477_s17 }
 0x2c6   : > { %s1479_s15 = scalar_lea.vmem %s1478_s17, 256 }
 0x334   : > { %v674_v51 = vpop.xlane.xlu1 %673 }
 0x335   : > { %v684_v52 = vsub.f32 %v528_v31, %v674_v51 }
 0x337   : > { %v688_v53 = vmul.f32 1.442695, %v684_v52 }
 0x338   : > { %v677_v54 = vpop.xlane.xlu0 %676 }
 0x339   : > { %1369 = vpow2.f32 %v688_v53  ;;  %v685_v55 = vsub.f32 %v574_v36, %v677_v54 }
 0x33b   : > { %v690_v56 = vmul.f32 1.442695, %v685_v55 }
 0x33c   : > { %v680_v57 = vpop.xlane.xlu0 %679 }
 0x33d   : > { %1371 = vpow2.f32 %v690_v56  ;;  %v686_v58 = vsub.f32 %v620_v41, %v680_v57 }
 0x33f   : > { %v692_v59 = vmul.f32 1.442695, %v686_v58 }
 0x340   : > { %v422_v60 = vpop.permute.xlu0 %421  ;;  %v683_v61 = vpop.xlane.xlu1 %682 }
 0x341   : > { %1373 = vpow2.f32 %v692_v59  ;;  %424 = vst.msk [vmem:[#allocation4] sm:$0xf] %vm412_vm2, %v422_v60  ;;  %v687_v62 = vsub.f32 %v666_v46, %v683_v61  ;;  %v1167_v61 = vld [vmem:[%s1986_s4] ss:$0 sm:$0xff] }
 0x343   : > { %v1370_v63 = vpop.eup %1369  ;;  %v694_v1 = vmul.f32 1.442695, %v687_v62 }
 0x344   : > { %v436_v2 = vpop.permute.xlu1 %435  ;;  %v696_v4 = vsel %vm487_vm3, %v1370_v63, 0.0 }
 0x345   : > { %1375 = vpow2.f32 %v694_v1  ;;  %439 = vst.msk [vmem:[#allocation4 + $0x4] sm:$0xf] %vm412_vm2, %v436_v2  ;;  %697 = vadd.xlane.f32.xlu0 %v696_v4 }
 0x347   : > { %v1372_v5 = vpop.eup %1371 }
 0x348   : > { %v699_v6 = vsel %vm487_vm3, %v1372_v5, 0.0  ;;  %v483_v7 = vld [vmem:[#allocation4] sm:$0xf] }
 0x349   : > { %700 = vadd.xlane.f32.xlu1 %v699_v6  ;;  %v725_v8 = vsel %vm723_vm4, %v483_v7, 0 }
 0x34a   : > { %1233 = vmatpush3.bf16.msra.mxu1 %v725_v8 }
 0x34b   : > { %v1374_v9 = vpop.eup %1373  ;;  %1244 = vmatprep.subr.bf16.mxu1 %v1566_v0 }
 0x34c   : > { %v702_v11 = vsel %vm487_vm3, %v1374_v9, 0.0  ;;  %v484_v12 = vld [vmem:[#allocation4 + $0x4] sm:$0xf] }
 0x34d   : > { %703 = vadd.xlane.f32.xlu0 %v702_v11  ;;  %v771_v13 = vsel %vm723_vm4, %v484_v12, 0 }
 0x34e   : > { %1239 = vmatpush3.bf16.msra.mxu0 %v771_v13 }
 0x34f   : > { %v1376_v14 = vpop.eup %1375  ;;  %1250 = vmatprep.subr.bf16.mxu0 %v1566_v0 }
 0x350   : > { %v705_v15 = vsel %vm487_vm3, %v1376_v14, 0.0 }
 0x351   : > { %706 = vadd.xlane.f32.xlu1 %v705_v15 }
 0x362   : > { %450 = vrot.lane.b32.xlu1 %v1840_v10, %s1577_s30  ;;  %s1039_s30 = sshll.u32 %s336_s18, 4  ;;  %s1934_s30 = int_to_ptr.vmem [resolvable:$true] %s1039_s30 }
 0x363   : > { %465 = vrot.lane.b32.xlu0 %v1840_v10, %s1578_s8  ;;  %s1473_s14 = scalar_lea.vmem %s1934_s30, 128  ;;  %p1480_p3 = scmp.lt.s32.totalorder %s1934_s30, %s1478_s17 }
 0x364   : > { %p1474_p8 = scmp.ne.s32.totalorder %s1934_s30, %s1473_s14  ;;  %p1481_p5 = scmp.lt.s32.totalorder %s1479_s15, %s1473_s14 }
 0x366   : > { %p1475_p1 = pnand %p1474_p8, %p2008_p12  ;;  %p1482_p9 = por %p1481_p5, %p1480_p3 }
 0x368   : > { %p1476_p10 = pneg %p1475_p1 }
 0x36a   : > { %p1483_p11 = pnand %p1482_p9, %p1476_p10 }
 0x3d2   : > { %v698_v16 = vpop.xlane.xlu0 %697 }
 0x3d3   : > { %1377 = vrcp.f32 %v698_v16 }
 0x3d6   : > { %v701_v17 = vpop.xlane.xlu1 %700 }
 0x3d7   : > { %1379 = vrcp.f32 %v701_v17 }
 0x3da   : > { %v704_v18 = vpop.xlane.xlu0 %703 }
 0x3db   : > { %1381 = vrcp.f32 %v704_v18  ;;  %v1172_v18 = vld [vmem:[%s1988_s6] ss:$0 sm:$0xff] }
 0x3dd   : > { %v1378_v19 = vpop.eup %1377 }
 0x3de   : > { %v712_v20 = vmul.f32 %v1378_v19, %v1370_v63  ;;  %v466_v21 = vpop.permute.xlu0 %465  ;;  %v707_v22 = vpop.xlane.xlu1 %706 }
 0x3df   : > { %469 = vst.msk [vmem:[#allocation4 + $0xc] sm:$0xf] %vm412_vm2, %v466_v21  ;;  %1383 = vrcp.f32 %v707_v22 }
 0x3e0   : > { %v716_v23 = vpack.c.bf16 %v712_v20, %v712_v20 }
 0x3e1   : > { %v1380_v24 = vpop.eup %1379 }
 0x3e2   : > { %v713_v25 = vmul.f32 %v1380_v24, %v1372_v5  ;;  %1235 = vmatmul.mubr.msk.bf16.vlgmr.msra.gmra.mrb[8].mxu1 %vm487_vm3, %v716_v23  ;;  %v451_v26 = vpop.permute.xlu1 %450 }
 0x3e3   : > { %454 = vst.msk [vmem:[#allocation4 + $0x8] sm:$0xf] %vm412_vm2, %v451_v26  ;;  %1246 = vmatprep.mubr.msk.bf16.mxu1 %vm1567_vm0, %v1566_v0 }
 0x3e4   : > { %v717_v10 = vpack.c.bf16 %v713_v25, %v713_v25 }
 0x3e5   : > { %v1382_v27 = vpop.eup %1381 }
 0x3e6   : > { %1241 = vmatmul.mubr.msk.bf16.vlgmr.msra.gmra.mrb[12].mxu0 %vm487_vm3, %v717_v10  ;;  %v486_v28 = vld [vmem:[#allocation4 + $0xc] sm:$0xf]  ;;  %v714_v31 = vmul.f32 %v1382_v27, %v1374_v9 }
 0x3e7   : > { %v863_v29 = vsel %vm723_vm4, %v486_v28, 0  ;;  %1252 = vmatprep.mubr.msk.bf16.mxu0 %vm1567_vm0, %v1566_v0 }
 0x3e8   : > { %1251 = vmatpush3.bf16.msra.mxu0 %v863_v29  ;;  %v718_v36 = vpack.c.bf16 %v714_v31, %v714_v31 }
 0x3e9   : > { %v1384_v30 = vpop.eup %1383 }
 0x3ea   : > { %v715_v32 = vmul.f32 %v1384_v30, %v1376_v14  ;;  %v485_v33 = vld [vmem:[#allocation4 + $0x8] sm:$0xf] }
 0x3eb   : > { %v817_v34 = vsel %vm723_vm4, %v485_v33, 0 }
 0x3ec   : > { %1245 = vmatpush3.bf16.msra.mxu1 %v817_v34  ;;  %v719_v35 = vpack.c.bf16 %v715_v32, %v715_v32 }
 0x3ed   : > { %1256 = vmatprep.subr.bf16.mxu1 %v1566_v0 }
 0x3ee   : > { %1253 = vmatmul.mubr.msk.bf16.vlgmr.msra.gmra.mrb[16].mxu0 %vm487_vm3, %v719_v35 }
 0x3ef   : > { %1247 = vmatmul.mubr.msk.bf16.vlgmr.msra.gmra.mrb[12].mxu1 %vm487_vm3, %v718_v36 }
 0x3f0   : > { %1260 = vmatprep.mubr.msk.bf16.mxu1 %vm1567_vm0, %v1566_v0  ;;  %1257 = vmatpush3.bf16.msra.mxu1 %v1367_v37 }
 0x3f1   : > { %1258 = vmatprep.subr.bf16.mxu1 %v1566_v0 }
 0x3f4   : > { %1259 = vmatpush3.bf16.msra.mxu1 %v1368_v39 }
 0x4b5   : > { %v761_v38 = vpop.f32.mrb[8].mxu1 }
 0x4b6   : > { %v1236_v40 = vpop.f32.mrb[9].mxu1 }
 0x4b7   : > { %v764_v41 = vpop.f32.mrb[10].mxu1 }
 0x4b8   : > { %v1237_v42 = vpop.f32.mrb[11].mxu1 }
 0x4b9   : > { %v807_v43 = vpop.f32.mrb[12].mxu0 }
 0x4ba   : > { %906 = vrot.lane.b32.xlu1 %v807_v43, %s1579_s9  ;;  %v1242_v44 = vpop.f32.mrb[13].mxu0 }
 0x4bb   : > { %v810_v45 = vpop.f32.mrb[14].mxu0 }
 0x4bc   : > { %v1243_v46 = vpop.f32.mrb[15].mxu0 }
 0x4c1   : > { %v899_v47 = vpop.f32.mrb[16].mxu0 }
 0x4c2   : > { %v853_v48 = vpop.f32.mrb[12].mxu1  ;;  %914 = vrot.lane.b32.xlu1 %v899_v47, %s1580_s11  ;;  %v1254_v49 = vpop.f32.mrb[17].mxu0  ;;  %s1932_s11 = scalar_lea.hbm %s1989_s7, %s1174_s22 }
 0x4c3   : > { %910 = vrot.lane.b32.xlu0 %v853_v48, %s1581_s13  ;;  %v1248_v0 = vpop.f32.mrb[13].mxu1  ;;  %v902_v50 = vpop.f32.mrb[18].mxu0  ;;  %s1025_s13 = scalar_lea.sflag [#allocation7], %s1808_s21 }
 0x4c4   : > { %v856_v51 = vpop.f32.mrb[14].mxu1  ;;  %v1255_v52 = vpop.f32.mrb[19].mxu0 }
 0x4c5   : > { %v1249_v53 = vpop.f32.mrb[15].mxu1 }
 0x52c   : > { %v907_v54 = vpop.permute.xlu1 %906 }
 0x52d   : > { %v917_v55 = vsel %vm487_vm3, %v761_v38, %v907_v54 }
 0x534   : > { %v915_v57 = vpop.permute.xlu1 %914 }
 0x535   : > { %v911_v56 = vpop.permute.xlu0 %910 }
 0x536   : > { %v919_v58 = vsel %vm918_vm5, %v917_v55, %v911_v56 }
 0x537   : > { %v921_v59 = vsel %vm920_vm6, %v919_v58, %v915_v57 }
 0x538   : > { %v924_v60 = vpack.c.bf16 %v921_v59, %v921_v59 }
 0x53a   : > { %1261 = vmatmul.mubr.msk.bf16.vlgmr.msra.gmra.mrb[16].mxu1 %vm367_vm1, %v924_v60 }
 0x60d   : > { %v986_v62 = vpop.f32.mrb[16].mxu1 }
 0x60e   : > { %v987_v63 = vadd.f32 %v1167_v61, %v986_v62  ;;  %v1262_v1 = vpop.f32.mrb[17].mxu1 }
 0x60f   : > { %v989_v2 = vpop.f32.mrb[18].mxu1 }
 0x610   : > { %v1263_v4 = vpop.f32.mrb[19].mxu1  ;;  %v992_v5 = vadd.f32 %v987_v63, %v1828_v3  ;;  %v1171_v3 = vld [vmem:[%s1987_s5] ss:$0 sm:$0xff] }
 0x612   : > { %v993_v6 = vsel %vm367_vm1, %v992_v5, 0.0 }
 0x613   : > { %994 = vadd.xlane.f32.xlu0 %v993_v6 }
 0x6a0   : > { %v995_v7 = vpop.xlane.xlu0 %994 }
 0x6a1   : > { %v997_v8 = vmul.f32 0.03125, %v995_v7 }
 0x6a3   : > { %v998_v9 = vsub.f32 %v992_v5, %v997_v8 }
 0x6a5   : > { %v999_v11 = vmul.f32 %v998_v9, %v998_v9 }
 0x6a7   : > { %v1000_v12 = vsel %vm367_vm1, %v999_v11, 0.0 }
 0x6a8   : > { %1001 = vadd.xlane.f32.xlu1 %v1000_v12 }
 0x735   : > { %v1002_v13 = vpop.xlane.xlu1 %1001 }
 0x736   : > { %v1003_v14 = vmul.f32 0.03125, %v1002_v13 }
 0x738   : > { %v1004_v15 = vadd.f32 1e-12, %v1003_v14 }
 0x73a   : > { %1385 = vrsqrt.f32 %v1004_v15 }
 0x744   : > { %v1386_v16 = vpop.eup %1385 }
 0x745   : > { %v1006_v17 = vmul.f32 %v1386_v16, %v998_v9 }
 0x747   : > { %v1014_v19 = vmul.f32 %v1171_v3, %v1006_v17 }
 0x749   : > { %v1022_v20 = vadd.f32 %v1172_v18, %v1014_v19 }
 0x74b   : > { %1023 = vst.msk [vmem:[%s336_s18] sm:$0xff] %vm367_vm1, %v1022_v20 }
 0x74c   : > { %1486 = shalt.err (!%p1483_p11)
}
 0x74d   : > { %s1487_s21 = scalar_lea.hbm %s1932_s11, 128  ;;  %s1491_s23 = scalar_lea.hbm %s1989_s7, 256 }
 0x74e   : > { %p1488_p0 = scmp.ne.s32.totalorder %s1932_s11, %s1487_s21  ;;  %p1492_p6 = scmp.lt.u32.totalorder %s1932_s11, %s1989_s7 }
 0x74f   : > { %p1493_p7 = scmp.lt.u32.totalorder %s1491_s23, %s1487_s21  ;;  %p1495_p8 = scmp.lt.u32.totalorder %s1487_s21, %s1932_s11 }
 0x750   : > { %p1489_p4 = pnand %p1488_p0, %p2008_p12 }
 0x751   : > { %p1494_p2 = por %p1493_p7, %p1492_p6 }
 0x752   : > { %p1490_p13 = pneg %p1489_p4 }
 0x753   : > { %p1496_p1 = por %p1495_p8, %p1494_p2 }
 0x755   : > { %p1497_p10 = pnand %p1496_p1, %p1490_p13 }
 0x757   : > { %1500 = shalt.err (!%p1497_p10)
}
 0x758   : > { %1274 = dma.vmem_to_hbm [thread:$0]  (%p2008_p12), %s1934_s30, 128, %s1932_s11, %s1025_s13  }
 0x759 PF: > { %s2009_s18 = sld [smem:[#allocation15_spill]]  ;;  %s2010_s8 = sld [smem:[#allocation16_spill]] }
 0x75a   : > { %p2012_p5 = scmp.ge.s32.totalorder %s1559_s29, 2 }
 0x75f   : > { %s1051_s9 = sand.u32 1, %s2009_s18   ;;  %p2011_p3 = scmp.ne.s32.totalorder %s2010_s8, 0 }
 0x760   : > { %s1052_s14 = scalar_lea.sflag [#allocation7], %s1051_s9 }
 0x761   : > { %p1288_p9 = pnand %p2012_p5, %p2011_p3 }
 0x763   : > { %1534 = dma.done.wait (!%p1288_p9), %s1052_s14, 128  }
 0x764   : > { %1536 = vsyncadd (!%p1288_p9), %s1052_s14, 4294967168  ;;  %s24_s29 = sadd.s32 1, %s1559_s29   ;;  %s2013_s24 = smov %s1543_s25 }
 0x765   : > { %p21_p11 = scmp.ge.s32.totalorder %s24_s29, 4   ;;  %s2014_s25 = smov %s1547_s26 }
 0x766   : > { %s2015_s26 = smov %s1765_s19  ;;  %s2016_s27 = smov %s1555_s28 }
 0x767   : > { %s2017_s28 = smov %s2019_s20  ;;  %23 = sbr.rel (!%p21_p11) target bundleno = 7 (0x7), region = 116 }
 0x76e   :  { %1057 = vsyncpa [#allocation6], 1 }
 0x76f   :  { %1059 = vsyncpa [#allocation6 + $0x1], 1 }
 0x770   :  { %1060 = vsyncpa [#allocation9], 1 }
 0x771   :  { %1061 = vsyncpa [#allocation7], 1 }
 0x772   :  { %1063 = vsyncpa [#allocation7 + $0x1], 1 }

</bundles_post_ra>
